<compile_context>
chip_gen: v5e
topology: v5e:2x2
jax: 0.10.0
libtpu: 0.0.40
codegen_flags: <defaults>
</compile_context>

<pallas_src>
import functools
import math

import jax
import jax.numpy as jnp
from jax import lax
from jax.experimental import pallas as pl
from jax.experimental.pallas import tpu as pltpu


def _round_up(x, m):
    return ((x + m - 1) // m) * m


def _vmem_limit_bytes():
    """Scoped-VMEM request with headroom below the physical capacity."""
    cap = 128 * 1024 * 1024
    try:
        cap = pltpu.get_tpu_info().vmem_capacity_bytes
    except Exception:  # fall back to a safe default if the query is unavailable
        pass
    # <= 3/4 of physical VMEM (~48 MiB on v7x), never more than 64 MiB.
    return int(min(64 * 1024 * 1024, (cap * 3) // 4))


# ----------------------------------------------------------------------------
# Pass 1: fused QKV projection (K/V computed once per batch, not per q-tile).
# ----------------------------------------------------------------------------
def qkv_proj_kernel(x_ref, w_ref, b_ref, q_ref, k_ref, v_ref, *, hp, scale):
    """One (batch, seq-tile) grid step.

    x_ref: (1, TS, Hp)   w_ref: (Hp, 3*Hp)   b_ref: (1, 3*Hp)
    q_ref / k_ref / v_ref: (1, TS, Hp)
    """
    x = x_ref[0]                                                   # (TS, Hp)
    qkv = (jnp.dot(x, w_ref[...], preferred_element_type=jnp.float32)
           + b_ref[...].astype(jnp.float32))                       # (TS, 3*Hp)
    # Lane-aligned slices (Hp is a multiple of 128).  Fold 1/sqrt(H) into Q so
    # the (TQ, S) scores never need a separate VPU scale pass.
    q_ref[0] = (qkv[:, :hp] * scale).astype(q_ref.dtype)
    k_ref[0] = qkv[:, hp:2 * hp].astype(k_ref.dtype)
    v_ref[0] = qkv[:, 2 * hp:].astype(v_ref.dtype)


# ----------------------------------------------------------------------------
# Pass 2: flash-style attention, online softmax over KV blocks.
# ----------------------------------------------------------------------------
def flash_attn_kernel(q_ref, k_ref, v_ref, o_ref, m_ref, l_ref, acc_ref,
                      *, tk, s_real, masked):
    """Grid = (B, num_q_tiles, num_kv_tiles); last axis is the reduction.

    q_ref: (1, TQ, Hp) (resident across ki)   k_ref/v_ref: (1, TK, Hp)
    o_ref: (1, TQ, Hp)   scratch: m (TQ,1) l (TQ,1) acc (TQ,Hp) f32
    """
    ki = pl.program_id(2)

    @pl.when(ki == 0)
    def _():
        m_ref[...] = jnp.full_like(m_ref, -jnp.inf)
        l_ref[...] = jnp.zeros_like(l_ref)
        acc_ref[...] = jnp.zeros_like(acc_ref)

    q = q_ref[0]                                                   # (TQ, Hp), pre-scaled
    k = k_ref[0]                                                   # (TK, Hp)
    v = v_ref[0]                                                   # (TK, Hp)

    # Contract last dims directly (no k.T transpose / XLU pass), f32 accumulate.
    s = lax.dot_general(q, k, dimension_numbers=(((1,), (1,)), ((), ())),
                        preferred_element_type=jnp.float32)        # (TQ, TK)

    if masked:  # static: only emitted when S was padded
        key_pos = ki * tk + lax.broadcasted_iota(jnp.int32, s.shape, 1)
        s = jnp.where(key_pos < s_real, s, -1e30)

    m_prev = m_ref[...]
    m_new = jnp.maximum(m_prev, jnp.max(s, axis=-1, keepdims=True))
    alpha = jnp.exp(m_prev - m_new)
    p = jnp.exp(s - m_new)
    l_ref[...] = alpha * l_ref[...] + jnp.sum(p, axis=-1, keepdims=True)
    acc_ref[...] = alpha * acc_ref[...] + jnp.dot(
        p.astype(v.dtype), v, preferred_element_type=jnp.float32)
    m_ref[...] = m_new

    @pl.when(ki == pl.num_programs(2) - 1)
    def _():
        o_ref[0] = (acc_ref[...]
                    * pl.reciprocal(l_ref[...], approx=True)).astype(o_ref.dtype)


# ----------------------------------------------------------------------------
# Wrapper
# ----------------------------------------------------------------------------
@functools.partial(jax.jit, static_argnames=("tq", "tk"))
def dual_attention(x, wq_t, wk_t, wv_t, bq, bk, bv, *, tq=128, tk=128):
    """x: (B, S, H); w*_t: (H, H) pre-transposed to (in, out); b*: (H,)."""
    B, S, H = x.shape
    dtype = x.dtype
    itemsize = jnp.dtype(dtype).itemsize

    # ---- Lane-dense hidden padding (zeros -> exact math). ----
    Hp = _round_up(H, 128)
    pad_h = Hp - H

    def pad_w(w):
        return jnp.pad(w, ((0, pad_h), (0, pad_h))) if pad_h else w

    def pad_b(b):
        return jnp.pad(b, ((0, pad_h),)) if pad_h else b

    w_qkv = jnp.concatenate([pad_w(wq_t), pad_w(wk_t), pad_w(wv_t)], axis=1)   # (Hp, 3Hp)
    b_qkv = jnp.concatenate([pad_b(bq), pad_b(bk), pad_b(bv)]).reshape(1, 3 * Hp)

    # ---- Sequence tiling: pad S so every tile is full; mask padded keys. ----
    TQ = min(tq, _round_up(S, 8))
    TK = min(tk, _round_up(S, 8))
    step = (TQ * TK) // math.gcd(TQ, TK)
    Sp = _round_up(S, step)
    pad_s = Sp - S
    masked = pad_s > 0

    xp = jnp.pad(x, ((0, 0), (0, pad_s), (0, pad_h))) if (pad_s or pad_h) else x

    scale = 1.0 / (float(H) ** 0.5)   # real H (matches torch Q.size(-1)**0.5)
    vmem_limit = _vmem_limit_bytes()

    # ---- Pass 1: fused QKV projection. ----
    n_s = Sp // TQ
    proj_cost = pl.CostEstimate(
        flops=2 * B * Sp * Hp * 3 * Hp,
        transcendentals=0,
        bytes_accessed=itemsize * (4 * B * Sp * Hp + Hp * 3 * Hp + 3 * Hp))
    # TODO(synk): trim the resident weight/bias tiles to single-buffering with
    # pipeline_mode=pl.Buffered(1) once the top-level TPU pipeline honors it;
    # their index maps are constant so they are never re-fetched either way.
    q, k, v = pl.pallas_call(
        functools.partial(qkv_proj_kernel, hp=Hp, scale=scale),
        out_shape=(jax.ShapeDtypeStruct((B, Sp, Hp), dtype),) * 3,
        grid_spec=pltpu.PrefetchScalarGridSpec(
            num_scalar_prefetch=0,
            grid=(B, n_s),
            in_specs=[
                pl.BlockSpec((1, TQ, Hp), lambda b, si: (b, si, 0)),   # x tile
                pl.BlockSpec((Hp, 3 * Hp), lambda b, si: (0, 0)),      # W_qkv (resident)
                pl.BlockSpec((1, 3 * Hp), lambda b, si: (0, 0)),       # b_qkv (resident)
            ],
            out_specs=[
                pl.BlockSpec((1, TQ, Hp), lambda b, si: (b, si, 0)),
                pl.BlockSpec((1, TQ, Hp), lambda b, si: (b, si, 0)),
                pl.BlockSpec((1, TQ, Hp), lambda b, si: (b, si, 0)),
            ],
        ),
        compiler_params=pltpu.CompilerParams(
            dimension_semantics=("parallel", "parallel"),
            vmem_limit_bytes=vmem_limit),
        cost_estimate=proj_cost,
    )(xp, w_qkv, b_qkv)

    # ---- Pass 2: flash attention over KV blocks. ----
    n_q = Sp // TQ
    n_k = Sp // TK
    attn_cost = pl.CostEstimate(
        flops=4 * B * Sp * Sp * Hp,
        transcendentals=B * Sp * Sp,
        bytes_accessed=itemsize * (2 * B * Sp * Hp            # q read + out write
                                   + 2 * B * n_q * Sp * Hp))  # k, v re-read per q-tile
    out_p = pl.pallas_call(
        functools.partial(flash_attn_kernel, tk=TK, s_real=S, masked=masked),
        out_shape=jax.ShapeDtypeStruct((B, Sp, Hp), dtype),
        grid_spec=pltpu.PrefetchScalarGridSpec(
            num_scalar_prefetch=0,
            grid=(B, n_q, n_k),
            in_specs=[
                pl.BlockSpec((1, TQ, Hp), lambda b, qi, ki: (b, qi, 0)),  # Q (resident over ki)
                pl.BlockSpec((1, TK, Hp), lambda b, qi, ki: (b, ki, 0)),  # K block
                pl.BlockSpec((1, TK, Hp), lambda b, qi, ki: (b, ki, 0)),  # V block
            ],
            out_specs=pl.BlockSpec((1, TQ, Hp), lambda b, qi, ki: (b, qi, 0)),
            scratch_shapes=[
                pltpu.VMEM((TQ, 1), jnp.float32),    # running max  m
                pltpu.VMEM((TQ, 1), jnp.float32),    # running sum  l
                pltpu.VMEM((TQ, Hp), jnp.float32),   # output accumulator
            ],
        ),
        compiler_params=pltpu.CompilerParams(
            dimension_semantics=("parallel", "parallel", "arbitrary"),
            vmem_limit_bytes=vmem_limit),
        cost_estimate=attn_cost,
    )(q, k, v)

    out = out_p
    if pad_s:
        out = out[:, :S, :]
    if pad_h:
        out = out[..., :H]
    return out


def dual_attention_ref(x, wq_t, wk_t, wv_t, bq, bk, bv):
    """Pure-JAX reference mirroring the PyTorch forward exactly."""
    q = x @ wq_t + bq
    k = x @ wk_t + bk
    v = x @ wv_t + bv
    scores = jnp.einsum("bqh,bkh->bqk", q, k) / (x.shape[-1] ** 0.5)
    attn = jax.nn.softmax(scores, axis=-1)
    return jnp.einsum("bqk,bkh->bqh", attn, v)


if __name__ == "__main__":
    B, S, H = 2, 8, 32  # batch, sequence length, hidden_size

    key = jax.random.PRNGKey(0)
    kx, kwq, kwk, kwv, kbq, kbk, kbv = jax.random.split(key, 7)

    x = jax.random.normal(kx, (B, S, H), dtype=jnp.float32)

    # PyTorch nn.Linear weights are (out, in); init deterministically and
    # pre-transpose to (in, out) for the kernel.
    bound = 1.0 / (H ** 0.5)

    def init_w(k):
        return jax.random.uniform(k, (H, H), jnp.float32, -bound, bound)

    def init_b(k):
        return jax.random.uniform(k, (H,), jnp.float32, -bound, bound)

    wq = init_w(kwq); wk = init_w(kwk); wv = init_w(kwv)
    bq = init_b(kbq); bk = init_b(kbk); bv = init_b(kbv)

    wq_t, wk_t, wv_t = wq.T, wk.T, wv.T

    out = dual_attention(x, wq_t, wk_t, wv_t, bq, bk, bv)
    out = jax.block_until_ready(out)

    ref = dual_attention_ref(x, wq_t, wk_t, wv_t, bq, bk, bv)
    assert out.shape == (B, S, H)
    # Tolerance covers the EUP approximate reciprocal in the softmax
    # normalization (everything else here is f32 with f32 accumulation).
    assert jnp.allclose(out, ref, atol=5e-3, rtol=5e-3), "mismatch vs reference"

    print("KERNEL_OK")
</pallas_src>

<mosaic_0001>
module attributes {stable_mosaic.version = 11 : i64} {
  func.func @flash_attn_kernel(%arg0: i32, %arg1: i32, %arg2: i32, %arg3: memref<1x8x128xf32, #tpu.memory_space<vmem>>, %arg4: memref<1x8x128xf32, #tpu.memory_space<vmem>>, %arg5: memref<1x8x128xf32, #tpu.memory_space<vmem>>, %arg6: memref<1x8x128xf32, #tpu.memory_space<vmem>>, %arg7: memref<8x1xf32, #tpu.memory_space<vmem>>, %arg8: memref<8x1xf32, #tpu.memory_space<vmem>>, %arg9: memref<8x128xf32, #tpu.memory_space<vmem>>) attributes {dimension_semantics = [#tpu.dimension_semantics<parallel>, #tpu.dimension_semantics<parallel>, #tpu.dimension_semantics<arbitrary>], iteration_bounds = array<i64: 2, 1, 1>, scalar_prefetch = 0 : i64, scratch_operands = 3 : i64, tpu.core_type = #tpu.core_type<tc>, window_params = [{transform_indices = @transform_0, window_bounds = array<i64: 1, 8, 128>}, {transform_indices = @transform_1, window_bounds = array<i64: 1, 8, 128>}, {transform_indices = @transform_2, window_bounds = array<i64: 1, 8, 128>}, {transform_indices = @transform_3, window_bounds = array<i64: 1, 8, 128>}]} {
    %c0_i32 = arith.constant 0 : i32
    %0 = arith.cmpi eq, %arg2, %c0_i32 : i32
    %1 = arith.extui %0 : i1 to i32
    %c0_i32_0 = arith.constant 0 : i32
    %2 = arith.cmpi ne, %1, %c0_i32_0 : i32
    scf.if %2 {
      %cst_26 = arith.constant 0xFF800000 : f32
      %35 = vector.broadcast %cst_26 : f32 to vector<8x1xf32>
      %c0_27 = arith.constant 0 : index
      %c0_28 = arith.constant 0 : index
      %36 = vector.load %arg7[%c0_27, %c0_28] : memref<8x1xf32, #tpu.memory_space<vmem>>, vector<8x1xf32>
      tpu.vector_store %arg7[%c0_27, %c0_28], %35 {strides = array<i32>} : memref<8x1xf32, #tpu.memory_space<vmem>>, vector<8x1xf32>,
      %cst_29 = arith.constant 0.000000e+00 : f32
      %37 = vector.broadcast %cst_29 : f32 to vector<8x1xf32>
      %c0_30 = arith.constant 0 : index
      %c0_31 = arith.constant 0 : index
      %38 = vector.load %arg8[%c0_30, %c0_31] : memref<8x1xf32, #tpu.memory_space<vmem>>, vector<8x1xf32>
      tpu.vector_store %arg8[%c0_30, %c0_31], %37 {strides = array<i32>} : memref<8x1xf32, #tpu.memory_space<vmem>>, vector<8x1xf32>,
      %cst_32 = arith.constant 0.000000e+00 : f32
      %39 = vector.broadcast %cst_32 : f32 to vector<8x128xf32>
      %c0_33 = arith.constant 0 : index
      %c0_34 = arith.constant 0 : index
      %40 = vector.load %arg9[%c0_33, %c0_34] : memref<8x128xf32, #tpu.memory_space<vmem>>, vector<8x128xf32>
      tpu.vector_store %arg9[%c0_33, %c0_34], %39 {strides = array<i32>} : memref<8x128xf32, #tpu.memory_space<vmem>>, vector<8x128xf32>,
    } else {
    }
    %c0 = arith.constant 0 : index
    %c0_1 = arith.constant 0 : index
    %c0_2 = arith.constant 0 : index
    %3 = vector.load %arg3[%c0, %c0_1, %c0_2] : memref<1x8x128xf32, #tpu.memory_space<vmem>>, vector<1x8x128xf32>
    %4 = vector.shape_cast %3 : vector<1x8x128xf32> to vector<8x128xf32>
    %c0_3 = arith.constant 0 : index
    %c0_4 = arith.constant 0 : index
    %c0_5 = arith.constant 0 : index
    %5 = vector.load %arg4[%c0_3, %c0_4, %c0_5] : memref<1x8x128xf32, #tpu.memory_space<vmem>>, vector<1x8x128xf32>
    %6 = vector.shape_cast %5 : vector<1x8x128xf32> to vector<8x128xf32>
    %c0_6 = arith.constant 0 : index
    %c0_7 = arith.constant 0 : index
    %c0_8 = arith.constant 0 : index
    %7 = vector.load %arg5[%c0_6, %c0_7, %c0_8] : memref<1x8x128xf32, #tpu.memory_space<vmem>>, vector<1x8x128xf32>
    %8 = vector.shape_cast %7 : vector<1x8x128xf32> to vector<8x128xf32>
    %cst = arith.constant dense<0.000000e+00> : vector<8x8xf32>
    %9 = tpu.matmul %4, %6, %cst {dimension_numbers = #tpu.dot_dimension_numbers<[1], [1], [0], [0], [0, 0, 1, 0], [], []>} : vector<8x128xf32>, vector<8x128xf32>, vector<8x8xf32> -> vector<8x8xf32>
    %c0_9 = arith.constant 0 : index
    %c0_10 = arith.constant 0 : index
    %10 = vector.load %arg7[%c0_9, %c0_10] : memref<8x1xf32, #tpu.memory_space<vmem>>, vector<8x1xf32>
    %cst_11 = arith.constant dense<0xFF800000> : vector<8xf32>
    %11 = vector.multi_reduction <maximumf>, %9, %cst_11 [1] : vector<8x8xf32> to vector<8xf32>
    %12 = vector.shape_cast %11 : vector<8xf32> to vector<8x1xf32>
    %13 = arith.maximumf %10, %12 : vector<8x1xf32>
    %14 = arith.subf %10, %13 : vector<8x1xf32>
    %15 = math.exp %14 : vector<8x1xf32>
    %16 = vector.broadcast %13 : vector<8x1xf32> to vector<8x8xf32>
    %17 = arith.subf %9, %16 : vector<8x8xf32>
    %18 = math.exp %17 : vector<8x8xf32>
    %c0_12 = arith.constant 0 : index
    %c0_13 = arith.constant 0 : index
    %19 = vector.load %arg8[%c0_12, %c0_13] : memref<8x1xf32, #tpu.memory_space<vmem>>, vector<8x1xf32>
    %20 = arith.mulf %15, %19 : vector<8x1xf32>
    %cst_14 = arith.constant dense<0.000000e+00> : vector<8xf32>
    %21 = vector.multi_reduction <add>, %18, %cst_14 [1] : vector<8x8xf32> to vector<8xf32>
    %22 = vector.shape_cast %21 : vector<8xf32> to vector<8x1xf32>
    %23 = arith.addf %20, %22 : vector<8x1xf32>
    %c0_15 = arith.constant 0 : index
    %c0_16 = arith.constant 0 : index
    %24 = vector.load %arg8[%c0_15, %c0_16] : memref<8x1xf32, #tpu.memory_space<vmem>>, vector<8x1xf32>
    tpu.vector_store %arg8[%c0_15, %c0_16], %23 {strides = array<i32>} : memref<8x1xf32, #tpu.memory_space<vmem>>, vector<8x1xf32>,
    %c0_17 = arith.constant 0 : index
    %c0_18 = arith.constant 0 : index
    %25 = vector.load %arg9[%c0_17, %c0_18] : memref<8x128xf32, #tpu.memory_space<vmem>>, vector<8x128xf32>
    %26 = vector.broadcast %15 : vector<8x1xf32> to vector<8x128xf32>
    %27 = arith.mulf %26, %25 : vector<8x128xf32>
    %cst_19 = arith.constant dense<0.000000e+00> : vector<8x128xf32>
    %28 = tpu.matmul %18, %8, %cst_19 {dimension_numbers = #tpu.dot_dimension_numbers<[1], [0], [0], [1], [0, 0, 1, 1], [], []>} : vector<8x8xf32>, vector<8x128xf32>, vector<8x128xf32> -> vector<8x128xf32>
    %29 = arith.addf %27, %28 : vector<8x128xf32>
    %c0_20 = arith.constant 0 : index
    %c0_21 = arith.constant 0 : index
    %30 = vector.load %arg9[%c0_20, %c0_21] : memref<8x128xf32, #tpu.memory_space<vmem>>, vector<8x128xf32>
    tpu.vector_store %arg9[%c0_20, %c0_21], %29 {strides = array<i32>} : memref<8x128xf32, #tpu.memory_space<vmem>>, vector<8x128xf32>,
    %c0_22 = arith.constant 0 : index
    %c0_23 = arith.constant 0 : index
    %31 = vector.load %arg7[%c0_22, %c0_23] : memref<8x1xf32, #tpu.memory_space<vmem>>, vector<8x1xf32>
    tpu.vector_store %arg7[%c0_22, %c0_23], %13 {strides = array<i32>} : memref<8x1xf32, #tpu.memory_space<vmem>>, vector<8x1xf32>,
    %c0_i32_24 = arith.constant 0 : i32
    %32 = arith.cmpi eq, %arg2, %c0_i32_24 : i32
    %33 = arith.extui %32 : i1 to i32
    %c0_i32_25 = arith.constant 0 : i32
    %34 = arith.cmpi ne, %33, %c0_i32_25 : i32
    scf.if %34 {
      %c0_26 = arith.constant 0 : index
      %c0_27 = arith.constant 0 : index
      %35 = vector.load %arg9[%c0_26, %c0_27] : memref<8x128xf32, #tpu.memory_space<vmem>>, vector<8x128xf32>
      %c0_28 = arith.constant 0 : index
      %c0_29 = arith.constant 0 : index
      %36 = vector.load %arg8[%c0_28, %c0_29] : memref<8x1xf32, #tpu.memory_space<vmem>>, vector<8x1xf32>
      %37 = tpu.reciprocal %36 {approx = true} : vector<8x1xf32> -> vector<8x1xf32>
      %38 = vector.broadcast %37 : vector<8x1xf32> to vector<8x128xf32>
      %39 = arith.mulf %35, %38 : vector<8x128xf32>
      %c0_30 = arith.constant 0 : index
      %c0_31 = arith.constant 0 : index
      %c0_32 = arith.constant 0 : index
      %40 = vector.load %arg6[%c0_30, %c0_31, %c0_32] : memref<1x8x128xf32, #tpu.memory_space<vmem>>, vector<1x8x128xf32>
      %41 = vector.shape_cast %40 : vector<1x8x128xf32> to vector<8x128xf32>
      %42 = vector.shape_cast %39 : vector<8x128xf32> to vector<1x8x128xf32>
      tpu.vector_store %arg6[%c0_30, %c0_31, %c0_32], %42 {strides = array<i32>} : memref<1x8x128xf32, #tpu.memory_space<vmem>>, vector<1x8x128xf32>,
    } else {
    }
    return
  }
  func.func @transform_0(%arg0: i32, %arg1: i32, %arg2: i32) -> (i32, i32, i32) {
    %c0_i32 = arith.constant 0 : i32
    %c0_i32_0 = arith.constant 0 : i32
    return %arg0, %arg1, %c0_i32 : i32, i32, i32
  }
  func.func @transform_1(%arg0: i32, %arg1: i32, %arg2: i32) -> (i32, i32, i32) {
    %c0_i32 = arith.constant 0 : i32
    %c0_i32_0 = arith.constant 0 : i32
    return %arg0, %arg2, %c0_i32 : i32, i32, i32
  }
  func.func @transform_2(%arg0: i32, %arg1: i32, %arg2: i32) -> (i32, i32, i32) {
    %c0_i32 = arith.constant 0 : i32
    %c0_i32_0 = arith.constant 0 : i32
    return %arg0, %arg2, %c0_i32 : i32, i32, i32
  }
  func.func @transform_3(%arg0: i32, %arg1: i32, %arg2: i32) -> (i32, i32, i32) {
    %c0_i32 = arith.constant 0 : i32
    %c0_i32_0 = arith.constant 0 : i32
    return %arg0, %arg1, %c0_i32 : i32, i32, i32
  }
}

module attributes {stable_mosaic.version = 11 : i64} {
  func.func @qkv_proj_kernel(%arg0: i32, %arg1: i32, %arg2: memref<1x8x128xf32, #tpu.memory_space<vmem>>, %arg3: memref<128x384xf32, #tpu.memory_space<vmem>>, %arg4: memref<1x384xf32, #tpu.memory_space<vmem>>, %arg5: memref<1x8x128xf32, #tpu.memory_space<vmem>>, %arg6: memref<1x8x128xf32, #tpu.memory_space<vmem>>, %arg7: memref<1x8x128xf32, #tpu.memory_space<vmem>>) attributes {dimension_semantics = [#tpu.dimension_semantics<parallel>, #tpu.dimension_semantics<parallel>], iteration_bounds = array<i64: 2, 1>, scalar_prefetch = 0 : i64, scratch_operands = 0 : i64, tpu.core_type = #tpu.core_type<tc>, window_params = [{transform_indices = @transform_0, window_bounds = array<i64: 1, 8, 128>}, {pipeline_mode = #tpu.pipeline_mode<synchronous>, transform_indices = @transform_1, window_bounds = array<i64: 128, 384>}, {pipeline_mode = #tpu.pipeline_mode<synchronous>, transform_indices = @transform_2, window_bounds = array<i64: 1, 384>}, {transform_indices = @transform_3, window_bounds = array<i64: 1, 8, 128>}, {transform_indices = @transform_4, window_bounds = array<i64: 1, 8, 128>}, {transform_indices = @transform_5, window_bounds = array<i64: 1, 8, 128>}]} {
    %c0 = arith.constant 0 : index
    %c0_0 = arith.constant 0 : index
    %c0_1 = arith.constant 0 : index
    %0 = vector.load %arg2[%c0, %c0_0, %c0_1] : memref<1x8x128xf32, #tpu.memory_space<vmem>>, vector<1x8x128xf32>
    %1 = vector.shape_cast %0 : vector<1x8x128xf32> to vector<8x128xf32>
    %c0_2 = arith.constant 0 : index
    %c0_3 = arith.constant 0 : index
    %2 = vector.load %arg3[%c0_2, %c0_3] : memref<128x384xf32, #tpu.memory_space<vmem>>, vector<128x384xf32>
    %cst = arith.constant dense<0.000000e+00> : vector<8x384xf32>
    %3 = tpu.matmul %1, %2, %cst {dimension_numbers = #tpu.dot_dimension_numbers<[1], [0], [0], [1], [0, 0, 1, 1], [], []>} : vector<8x128xf32>, vector<128x384xf32>, vector<8x384xf32> -> vector<8x384xf32>
    %c0_4 = arith.constant 0 : index
    %c0_5 = arith.constant 0 : index
    %4 = vector.load %arg4[%c0_4, %c0_5] : memref<1x384xf32, #tpu.memory_space<vmem>>, vector<1x384xf32>
    %5 = vector.broadcast %4 : vector<1x384xf32> to vector<8x384xf32>
    %6 = arith.addf %3, %5 : vector<8x384xf32>
    %7 = vector.extract_strided_slice %6 {offsets = [0, 0], sizes = [8, 128], strides = [1, 1]} : vector<8x384xf32> to vector<8x128xf32>
    %cst_6 = arith.constant 0.176776692 : f32
    %8 = vector.broadcast %cst_6 : f32 to vector<8x128xf32>
    %9 = arith.mulf %7, %8 : vector<8x128xf32>
    %c0_7 = arith.constant 0 : index
    %c0_8 = arith.constant 0 : index
    %c0_9 = arith.constant 0 : index
    %10 = vector.load %arg5[%c0_7, %c0_8, %c0_9] : memref<1x8x128xf32, #tpu.memory_space<vmem>>, vector<1x8x128xf32>
    %11 = vector.shape_cast %10 : vector<1x8x128xf32> to vector<8x128xf32>
    %12 = vector.shape_cast %9 : vector<8x128xf32> to vector<1x8x128xf32>
    tpu.vector_store %arg5[%c0_7, %c0_8, %c0_9], %12 {strides = array<i32>} : memref<1x8x128xf32, #tpu.memory_space<vmem>>, vector<1x8x128xf32>,
    %13 = vector.extract_strided_slice %6 {offsets = [0, 128], sizes = [8, 128], strides = [1, 1]} : vector<8x384xf32> to vector<8x128xf32>
    %c0_10 = arith.constant 0 : index
    %c0_11 = arith.constant 0 : index
    %c0_12 = arith.constant 0 : index
    %14 = vector.load %arg6[%c0_10, %c0_11, %c0_12] : memref<1x8x128xf32, #tpu.memory_space<vmem>>, vector<1x8x128xf32>
    %15 = vector.shape_cast %14 : vector<1x8x128xf32> to vector<8x128xf32>
    %16 = vector.shape_cast %13 : vector<8x128xf32> to vector<1x8x128xf32>
    tpu.vector_store %arg6[%c0_10, %c0_11, %c0_12], %16 {strides = array<i32>} : memref<1x8x128xf32, #tpu.memory_space<vmem>>, vector<1x8x128xf32>,
    %17 = vector.extract_strided_slice %6 {offsets = [0, 256], sizes = [8, 128], strides = [1, 1]} : vector<8x384xf32> to vector<8x128xf32>
    %c0_13 = arith.constant 0 : index
    %c0_14 = arith.constant 0 : index
    %c0_15 = arith.constant 0 : index
    %18 = vector.load %arg7[%c0_13, %c0_14, %c0_15] : memref<1x8x128xf32, #tpu.memory_space<vmem>>, vector<1x8x128xf32>
    %19 = vector.shape_cast %18 : vector<1x8x128xf32> to vector<8x128xf32>
    %20 = vector.shape_cast %17 : vector<8x128xf32> to vector<1x8x128xf32>
    tpu.vector_store %arg7[%c0_13, %c0_14, %c0_15], %20 {strides = array<i32>} : memref<1x8x128xf32, #tpu.memory_space<vmem>>, vector<1x8x128xf32>,
    return
  }
  func.func @transform_0(%arg0: i32, %arg1: i32) -> (i32, i32, i32) {
    %c0_i32 = arith.constant 0 : i32
    %c0_i32_0 = arith.constant 0 : i32
    return %arg0, %arg1, %c0_i32 : i32, i32, i32
  }
  func.func @transform_1(%arg0: i32, %arg1: i32) -> (i32, i32) {
    %c0_i32 = arith.constant 0 : i32
    %c0_i32_0 = arith.constant 0 : i32
    %c0_i32_1 = arith.constant 0 : i32
    return %c0_i32, %c0_i32_0 : i32, i32
  }
  func.func @transform_2(%arg0: i32, %arg1: i32) -> (i32, i32) {
    %c0_i32 = arith.constant 0 : i32
    %c0_i32_0 = arith.constant 0 : i32
    %c0_i32_1 = arith.constant 0 : i32
    return %c0_i32, %c0_i32_0 : i32, i32
  }
  func.func @transform_3(%arg0: i32, %arg1: i32) -> (i32, i32, i32) {
    %c0_i32 = arith.constant 0 : i32
    %c0_i32_0 = arith.constant 0 : i32
    return %arg0, %arg1, %c0_i32 : i32, i32, i32
  }
  func.func @transform_4(%arg0: i32, %arg1: i32) -> (i32, i32, i32) {
    %c0_i32 = arith.constant 0 : i32
    %c0_i32_0 = arith.constant 0 : i32
    return %arg0, %arg1, %c0_i32 : i32, i32, i32
  }
  func.func @transform_5(%arg0: i32, %arg1: i32) -> (i32, i32, i32) {
    %c0_i32 = arith.constant 0 : i32
    %c0_i32_0 = arith.constant 0 : i32
    return %arg0, %arg1, %c0_i32 : i32, i32, i32
  }
}

</mosaic_0001>

<bundles_post_ra>
// kernel: dual_attention.3
= control target key start
LH: loop header
LB: loop body
LE: loop exit
PB: predicated region body
PF: predicated region fallthrough
CT: control target
= control target key end

     0   :  { %8 = vsyncpa [#allocation6], 0  ;;  %s771_s0 = inlined_call_operand.vmem [shape: f32[2,8,128], index: 0, kind: input, shape index: {}]   ;;  %s772_s1 = inlined_call_operand.vmem [shape: f32[2,8,128], index: 1, kind: input, shape index: {}]   ;;  %s773_s2 = inlined_call_operand.vmem [shape: f32[2,8,128], index: 2, kind: input, shape index: {}]   ;;  %s774_s3 = inlined_call_operand.hbm [shape: f32[2,8,128], index: 3, kind: output, shape index: {}]  }
   0x1   :  { %10 = vsyncpa [#allocation6 + $0x1], 0  ;;  %s661_s12 = smov 0   ;;  %s663_s13 = smov 0  }
   0x2   :  { %s665_s14 = smov 0   ;;  %s667_s15 = smov 0  }
   0x3   :  { %s669_s16 = smov 0   ;;  %s671_s17 = smov 0  }
   0x4 LB: > { %s477_s18 = sadd.s32 4294967295, %s636_s17   ;;  %s478_s19 = sadd.s32 4294967294, %s636_s17   ;;  %s636_s17 = sphi %s671_s17, %s16_s17   ;;  %s632_s16 = sphi %s669_s16, %s781_s16   ;;  %s628_s15 = sphi %s667_s15, %s780_s15   ;;  %s624_s14 = sphi %s665_s14, %s779_s14   ;;  %s620_s13 = sphi %s663_s13, %s778_s13   ;;  %s616_s12 = sphi %s661_s12, %s777_s12  }
   0x5   : > { %s35_s20 = sadd.s32 1, %s632_s16  ;;  %s128_s21 = sadd.s32 1, %s624_s14 }
   0x6   : > { %p37_p0 = scmp.ge.s32.totalorder %s35_s20, 2  ;;  %p138_p1 = scmp.ne.s32.totalorder %s624_s14, %s620_s13 }
   0x7   : > { %p139_p2 = scmp.eq.s32.totalorder %s477_s18, 1  ;;  %p144_p3 = scmp.ne.s32.totalorder %s620_s13, %s616_s12 }
   0x8   : > { %s783_s20 = smov (%p37_p0, %s35_s20), 0  ;;  %p145_p5 = scmp.eq.s32.totalorder %s478_s19, 1 }
   0x9   : > { %p701_p4 = por %p139_p2, %p138_p1  ;;  %s123_s23 = ssub.s32 %s632_s16, %s783_s20 }
   0xa   : > { %p481_p6 = scmp.ge.s32.totalorder %s636_s17, 1  ;;  %p126_p7 = scmp.eq.s32.totalorder %s123_s23, 0 }
   0xb   : > { %p708_p8 = por %p145_p5, %p144_p3  ;;  %p193_p9 = scmp.lt.s32.totalorder %s636_s17, 3 }
   0xc   : > { %s714_s25 = scalar_select %p126_p7, %s624_s14, %s128_s21  }
   0xd   : > { %p194_p10 = pnand %p481_p6, %p193_p9 }
   0xe   : > { %p233_p11 = scmp.lt.s32.totalorder (!%p194_p10), %s628_s15, 1  ;;  %s230_s10 = sand.u32 (!%p194_p10), 1, %s620_s13  }
   0xf   : > { %197 = sbr.rel (%p194_p10) target bundleno = 629 (0x275), region = 32  ;;  %s482_s11 = sshll.u32 (!%p194_p10), %s230_s10, 3 }
  0x10   : > { %s488_s18 = sshll.u32 (!%p194_p10), %s628_s15, 3  ;;  %s357_s29 = scalar_lea.sflag (!%p194_p10), [#allocation6], %s230_s10 }
  0x11   : > { %s368_s23 = scalar_lea.hbm (!%p194_p10), %s774_s3, %s488_s18 }
  0x12   : > { %s372_s28 = sshll.u32 (!%p194_p10), %s368_s23, 4  ;;  %s373_s28 = int_to_ptr.hbm [resolvable:$true] %s372_s28 }
  0x14   : > { %s234_s26 = scalar_select %p233_p11, %s628_s15, 1  ;;  %vm258_vm0 = vcmask 7168   ;;  %v638_v2 = vmov -inf   ;;  %vm286_vm1 = vcmask 64512   ;;  %v639_v5 = vmov 0  }
  0x15   : > { %259 = vst.msk [vmem:[#allocation2] sm:$0xff] %vm258_vm0, %v638_v2  ;;  %549 = vset.pattern.permute.xlu0 %v639_v5  ;;  %550 = vset.pattern.permute.xlu1 %v639_v5  ;;  %v640_v6 = vmov 0.0  }
  0x16   : > { %s483_s27 = sshll.u32 %s234_s26, 3  ;;  %551 = vset.pattern.permute.xlu2 %v639_v5  ;;  %260 = vst.msk [vmem:[#allocation3] sm:$0xff] %vm258_vm0, %v640_v6  ;;  %s232_s26 = scalar_lea.vmem [#allocation5], %s482_s11 }
  0x17   : > { %s246_s30 = scalar_lea.vmem %s772_s1, %s483_s27  ;;  %s239_s6 = scalar_lea.vmem %s771_s0, %s483_s27 }
  0x18   : > { %v263_v0 = vld [vmem:[%s246_s30] sm:$0xff]  ;;  %s253_s9 = scalar_lea.vmem %s773_s2, %s483_s27  ;;  %s370_s27 = sshll.u32 %s232_s26, 4  ;;  %s371_s27 = int_to_ptr.vmem [resolvable:$true] %s370_s27 }
  0x19   : > { %280 = vmatpush.xpose.msra.mxu0 %v263_v0  ;;  %v262_v1 = vld [vmem:[%s239_s6] sm:$0xff]  ;;  %s572_s30 = sshra.s32 %s373_s28, 4  ;;  %s578_s6 = scalar_lea.hbm %s774_s3, 16  ;;  %s573_s30 = int_to_ptr.hbm [resolvable:$true] %s572_s30 }
  0x1a   : > { %v264_v11 = vld [vmem:[%s253_s9] sm:$0xff]  ;;  %s574_s15 = scalar_lea.hbm %s573_s30, 8  ;;  %p579_p1 = scmp.lt.s32.totalorder %s573_s30, %s774_s3 }
  0x1b   : > { %335 = vmatpush.msra.mxu1 %v264_v11  ;;  %p575_p12 = scmp.ne.s32.totalorder %s573_s30, %s574_s15  ;;  %p580_p2 = scmp.lt.s32.totalorder %s578_s6, %s574_s15 }
  0x1c   : > { %281 = vmatmul.f32.vlgmr.msra.gmra.mxu0 %v262_v1  ;;  %v285_v7 = vld [vmem:[#allocation2] sm:$0xff] }
  0x1d   : > { %v302_v19 = vld [vmem:[#allocation3] sm:$0xff]  ;;  %p576_p13 = pnand %p575_p12, %p701_p4  ;;  %p581_p3 = por %p580_p2, %p579_p1 }
  0x1f   : > { %p577_p0 = pneg %p576_p13 }
  0x21   : > { %p582_p5 = pnand %p581_p3, %p577_p0 }
  0x99   : > { %v282_v3 = vpop.f32.mrf.mxu0 }
  0x9a   : > { %v287_v4 = vsel %vm286_vm1, %v282_v3, -inf }
  0x9b   : > { %288 = vmax.xlane.f32.xlu0 %v287_v4 }
 0x10e   : > { %v289_v8 = vpop.xlane.xlu0 %288 }
 0x10f   : > { %v290_v9 = vmax.f32 %v285_v7, %v289_v8 }
 0x111   : > { %v291_v10 = vsub.f32 %v285_v7, %v290_v9  ;;  %342 = vst.msk [vmem:[#allocation2] sm:$0xff] %vm258_vm0, %v290_v9  ;;  %296 = vperm.xlu0 %549, %v290_v9  }
 0x113   : > { %v292_v17 = vmul.f32 1.442695, %v291_v10 }
 0x183   : > { %v297_v12 = vpop.permute.xlu0 %296 }
 0x184   : > { %v299_v13 = vsub.f32 %v282_v3, %v297_v12 }
 0x186   : > { %v300_v14 = vmul.f32 1.442695, %v299_v13 }
 0x188   : > { %552 = vpow2.f32 %v300_v14 }
 0x189   : > { %554 = vpow2.f32 %v292_v17 }
 0x18e   : > { %v553_v15 = vpop.eup %552 }
 0x18f   : > { %486 = vmatmul.msk.f32.vlgmr.msra.gmra.mxu1 %vm286_vm1, %v553_v15  ;;  %v304_v16 = vsel %vm286_vm1, %v553_v15, 0.0  ;;  %v555_v18 = vpop.eup %554 }
 0x190   : > { %305 = vadd.xlane.f32.xlu1 %v304_v16  ;;  %v303_v20 = vmul.f32 %v555_v18, %v302_v19 }
 0x1a9   : > { %313 = vperm.xlu1 %550, %v555_v18  }
 0x203   : > { %v306_v21 = vpop.xlane.xlu1 %305 }
 0x204   : > { %v307_v22 = vadd.f32 %v306_v21, %v303_v20 }
 0x206   : > { %309 = vst.msk [vmem:[#allocation3] sm:$0xff] %vm258_vm0, %v307_v22 }
 0x20c   : > { %v337_v27 = vpop.f32.mrf.mxu1 }
 0x20d   : > { %v347_v23 = vld [vmem:[#allocation3] sm:$0xff] }
 0x20e   : > { %556 = vrcp.f32 %v347_v23 }
 0x214   : > { %v557_v24 = vpop.eup %556 }
 0x215   : > { %351 = vperm.xlu2 %551, %v557_v24  }
 0x21b   : > { %v314_v25 = vpop.permute.xlu1 %313 }
 0x21c   : > { %v316_v26 = vmul.f32 0.0, %v314_v25 }
 0x21e   : > { %v340_v28 = vadd.f32 %v337_v27, %v316_v26 }
 0x26f   : > { %v352_v29 = vpop.permute.xlu2 %351 }
 0x270   : > { %v354_v30 = vmul.f32 %v352_v29, %v340_v28 }
 0x272   : > { %355 = vst [vmem:[%s232_s26] sm:$0xff] %v354_v30 }
 0x273   : > { %585 = shalt.err (!%p582_p5)
}
 0x274   : > { %491 = dma.vmem_to_hbm [thread:$0]  (%p701_p4), %s371_s27, 128, %s373_s28, %s357_s29  }
 0x275 PF: > { %p497_p6 = scmp.ge.s32.totalorder %s636_s17, 2  ;;  %s384_s9 = sand.u32 1, %s616_s12  }
 0x276   : > { %s385_s10 = scalar_lea.sflag [#allocation6], %s384_s9 }
 0x277   : > { %p494_p7 = pnand %p497_p6, %p708_p8 }
 0x279   : > { %p495_p9 = pneg %p494_p7 }
 0x27b   : > { %611 = dma.done.wait (%p495_p9), %s385_s10, 128  }
 0x27c   : > { %613 = vsyncadd (%p495_p9), %s385_s10, 4294967168  ;;  %s16_s17 = sadd.s32 1, %s636_s17   ;;  %s777_s12 = smov %s620_s13 }
 0x27d   : > { %p13_p10 = scmp.ge.s32.totalorder %s16_s17, 4   ;;  %s778_s13 = smov %s624_s14 }
 0x27e   : > { %s779_s14 = smov %s714_s25  ;;  %s780_s15 = smov %s632_s16 }
 0x27f   : > { %s781_s16 = smov %s783_s20  ;;  %15 = sbr.rel (!%p13_p10) target bundleno = 4 (0x4), region = 81 }
 0x284   :  { %391 = vsyncpa [#allocation6], 1 }
 0x285   :  { %393 = vsyncpa [#allocation6 + $0x1], 1 }

// kernel: dual_attention.2
= control target key start
LH: loop header
LB: loop body
LE: loop exit
PB: predicated region body
PF: predicated region fallthrough
CT: control target
= control target key end

     0   :  { %s654_s18 = smov 0   ;;  %s656_s19 = smov 0   ;;  %s850_s0 = inlined_call_operand.vmem [shape: f32[2,8,128], index: 0, kind: input, shape index: {}]   ;;  %s851_s1 = inlined_call_operand.vmem [shape: f32[128,384], index: 1, kind: input, shape index: {}]   ;;  %s852_s2 = inlined_call_operand.vmem [shape: f32[1,384], index: 2, kind: input, shape index: {}]   ;;  %s853_s3 = inlined_call_operand.vmem [shape: f32[2,8,128], index: 3, kind: output, shape index: {0}]   ;;  %s854_s4 = inlined_call_operand.vmem [shape: f32[2,8,128], index: 4, kind: output, shape index: {1}]   ;;  %s855_s5 = inlined_call_operand.vmem [shape: f32[2,8,128], index: 5, kind: output, shape index: {2}]  }
   0x1   :  { %s658_s20 = smov 0  }
   0x2 LB: > { %s28_s21 = sadd.s32 1, %s618_s19  ;;  %p569_p0 = scmp.ge.s32.totalorder %s622_s20, 1  ;;  %s622_s20 = sphi %s658_s20, %s16_s20   ;;  %s618_s19 = sphi %s656_s19, %s857_s19   ;;  %s614_s18 = sphi %s654_s18, %s856_s18  }
   0x3   : > { %p30_p1 = scmp.ge.s32.totalorder %s28_s21, 2  ;;  %p214_p2 = scmp.lt.s32.totalorder %s622_s20, 3 }
   0x5   : > { %s859_s21 = smov (%p30_p1, %s28_s21), 0  ;;  %p215_p3 = pnand %p569_p0, %p214_p2 }
   0x6   : > { %p260_p4 = scmp.lt.s32.totalorder (!%p215_p3), %s614_s18, 1 }
   0x7   : > { %218 = sbr.rel (%p215_p3) target bundleno = 179 (0xb3), region = 32 }
   0xc   : > { %v336_v0 = vld [vmem:[%s851_s1 + $0x178] sm:$0xff]  ;;  %v333_v1 = vld [vmem:[%s851_s1 + $0x160] sm:$0xff]  ;;  %v334_v2 = vld [vmem:[%s851_s1 + $0x168] sm:$0xff]  ;;  %s861_s18 = smov (!%p260_p4, %s614_s18), 1 }
   0xd   : > { %385 = vmatpush.msra.mxu2 %v336_v0  ;;  %345 = vmatpush.msra.mxu0 %v334_v2  ;;  %v331_v3 = vld [vmem:[%s851_s1 + $0x150] sm:$0xff]  ;;  %v330_v5 = vld [vmem:[%s851_s1 + $0x148] sm:$0xff]  ;;  %v328_v6 = vld [vmem:[%s851_s1 + $0x138] sm:$0xff]  ;;  %s793_s12 = sshll.u32 %s861_s18, 3 }
   0xe   : > { %v335_v4 = vld [vmem:[%s851_s1 + $0x170] sm:$0xff]  ;;  %v332_v7 = vld [vmem:[%s851_s1 + $0x158] sm:$0xff]  ;;  %v329_v8 = vld [vmem:[%s851_s1 + $0x140] sm:$0xff]  ;;  %s266_s26 = scalar_lea.vmem %s850_s0, %s793_s12  ;;  %s273_s17 = scalar_lea.vmem %s853_s3, %s793_s12 }
   0xf   : > { %365 = vmatpush.msra.mxu1 %v335_v4  ;;  %386 = vmatpush.msra.mxu2 %v333_v1  ;;  %v327_v9 = vld [vmem:[%s851_s1 + $0x130] sm:$0xff]  ;;  %v325_v10 = vld [vmem:[%s851_s1 + $0x120] sm:$0xff]  ;;  %v326_v11 = vld [vmem:[%s851_s1 + $0x128] sm:$0xff]  ;;  %s280_s24 = scalar_lea.vmem %s854_s4, %s793_s12 }
  0x10   : > { %346 = vmatpush.msra.mxu0 %v331_v3  ;;  %v324_v12 = vld [vmem:[%s851_s1 + $0x118] sm:$0xff]  ;;  %v322_v13 = vld [vmem:[%s851_s1 + $0x108] sm:$0xff]  ;;  %v323_v14 = vld [vmem:[%s851_s1 + $0x110] sm:$0xff] }
  0x11   : > { %366 = vmatpush.msra.mxu1 %v332_v7  ;;  %387 = vmatpush.msra.mxu2 %v330_v5  ;;  %v321_v15 = vld [vmem:[%s851_s1 + $0x100] sm:$0xff]  ;;  %v319_v16 = vld [vmem:[%s851_s1 + $0xf0] sm:$0xff]  ;;  %v320_v17 = vld [vmem:[%s851_s1 + $0xf8] sm:$0xff] }
  0x12   : > { %347 = vmatpush.msra.mxu0 %v328_v6  ;;  %v318_v18 = vld [vmem:[%s851_s1 + $0xe8] sm:$0xff]  ;;  %v316_v19 = vld [vmem:[%s851_s1 + $0xd8] sm:$0xff]  ;;  %v317_v20 = vld [vmem:[%s851_s1 + $0xe0] sm:$0xff] }
  0x13   : > { %367 = vmatpush.msra.mxu1 %v329_v8  ;;  %388 = vmatpush.msra.mxu2 %v327_v9  ;;  %v315_v21 = vld [vmem:[%s851_s1 + $0xd0] sm:$0xff]  ;;  %v313_v22 = vld [vmem:[%s851_s1 + $0xc0] sm:$0xff]  ;;  %v314_v23 = vld [vmem:[%s851_s1 + $0xc8] sm:$0xff] }
  0x14   : > { %348 = vmatpush.msra.mxu0 %v325_v10  ;;  %v312_v24 = vld [vmem:[%s851_s1 + $0xb8] sm:$0xff]  ;;  %v310_v25 = vld [vmem:[%s851_s1 + $0xa8] sm:$0xff]  ;;  %v311_v26 = vld [vmem:[%s851_s1 + $0xb0] sm:$0xff] }
  0x15   : > { %368 = vmatpush.msra.mxu1 %v326_v11  ;;  %389 = vmatpush.msra.mxu2 %v324_v12  ;;  %v309_v27 = vld [vmem:[%s851_s1 + $0xa0] sm:$0xff]  ;;  %v307_v28 = vld [vmem:[%s851_s1 + $0x90] sm:$0xff]  ;;  %v308_v29 = vld [vmem:[%s851_s1 + $0x98] sm:$0xff] }
  0x16   : > { %349 = vmatpush.msra.mxu0 %v322_v13  ;;  %v306_v30 = vld [vmem:[%s851_s1 + $0x88] sm:$0xff]  ;;  %v304_v31 = vld [vmem:[%s851_s1 + $0x78] sm:$0xff]  ;;  %v305_v32 = vld [vmem:[%s851_s1 + $0x80] sm:$0xff] }
  0x17   : > { %369 = vmatpush.msra.mxu1 %v323_v14  ;;  %390 = vmatpush.msra.mxu2 %v321_v15  ;;  %v303_v33 = vld [vmem:[%s851_s1 + $0x70] sm:$0xff]  ;;  %v301_v34 = vld [vmem:[%s851_s1 + $0x60] sm:$0xff]  ;;  %v302_v35 = vld [vmem:[%s851_s1 + $0x68] sm:$0xff] }
  0x18   : > { %350 = vmatpush.msra.mxu0 %v319_v16  ;;  %v300_v36 = vld [vmem:[%s851_s1 + $0x58] sm:$0xff]  ;;  %v298_v37 = vld [vmem:[%s851_s1 + $0x48] sm:$0xff]  ;;  %v299_v38 = vld [vmem:[%s851_s1 + $0x50] sm:$0xff] }
  0x19   : > { %370 = vmatpush.msra.mxu1 %v320_v17  ;;  %391 = vmatpush.msra.mxu2 %v318_v18  ;;  %v297_v39 = vld [vmem:[%s851_s1 + $0x40] sm:$0xff]  ;;  %v295_v40 = vld [vmem:[%s851_s1 + $0x30] sm:$0xff]  ;;  %v296_v41 = vld [vmem:[%s851_s1 + $0x38] sm:$0xff] }
  0x1a   : > { %351 = vmatpush.msra.mxu0 %v316_v19  ;;  %v294_v42 = vld [vmem:[%s851_s1 + $0x28] sm:$0xff]  ;;  %v292_v43 = vld [vmem:[%s851_s1 + $0x18] sm:$0xff]  ;;  %v293_v44 = vld [vmem:[%s851_s1 + $0x20] sm:$0xff] }
  0x1b   : > { %371 = vmatpush.msra.mxu1 %v317_v20  ;;  %392 = vmatpush.msra.mxu2 %v315_v21  ;;  %v291_v45 = vld [vmem:[%s851_s1 + $0x10] sm:$0xff]  ;;  %v289_v46 = vld [vmem:[%s851_s1] sm:$0xff]  ;;  %v290_v48 = vld [vmem:[%s851_s1 + $0x8] sm:$0xff] }
  0x1c   : > { %352 = vmatpush.msra.mxu0 %v313_v22  ;;  %v288_v47 = vld [vmem:[%s266_s26] sm:$0xff]  ;;  %s287_s26 = scalar_lea.vmem %s855_s5, %s793_s12 }
  0x1d   : > { %372 = vmatpush.msra.mxu1 %v314_v23  ;;  %393 = vmatpush.msra.mxu2 %v312_v24  ;;  %v337_v49 = vld [vmem:[%s852_s2] sm:$0x7] }
  0x1e   : > { %353 = vmatpush.msra.mxu0 %v310_v25  ;;  %v339_v50 = vperm.slane %v337_v49, 0  ;;  %v340_v51 = vperm.slane %v337_v49, 1  ;;  %v341_v57 = vperm.slane %v337_v49, 2 }
  0x1f   : > { %373 = vmatpush.msra.mxu1 %v311_v26  ;;  %394 = vmatpush.msra.mxu2 %v309_v27 }
  0x20   : > { %354 = vmatpush.msra.mxu0 %v307_v28 }
  0x21   : > { %374 = vmatpush.msra.mxu1 %v308_v29  ;;  %395 = vmatpush.msra.mxu2 %v306_v30 }
  0x22   : > { %355 = vmatpush.msra.mxu0 %v304_v31 }
  0x23   : > { %375 = vmatpush.msra.mxu1 %v305_v32  ;;  %396 = vmatpush.msra.mxu2 %v303_v33 }
  0x24   : > { %356 = vmatpush.msra.mxu0 %v301_v34 }
  0x25   : > { %376 = vmatpush.msra.mxu1 %v302_v35  ;;  %397 = vmatpush.msra.mxu2 %v300_v36 }
  0x26   : > { %357 = vmatpush.msra.mxu0 %v298_v37 }
  0x27   : > { %377 = vmatpush.msra.mxu1 %v299_v38  ;;  %398 = vmatpush.msra.mxu2 %v297_v39 }
  0x28   : > { %358 = vmatpush.msra.mxu0 %v295_v40 }
  0x29   : > { %378 = vmatpush.msra.mxu1 %v296_v41  ;;  %399 = vmatpush.msra.mxu2 %v294_v42 }
  0x2a   : > { %359 = vmatpush.msra.mxu0 %v292_v43 }
  0x2b   : > { %379 = vmatpush.msra.mxu1 %v293_v44  ;;  %400 = vmatpush.msra.mxu2 %v291_v45 }
  0x2c   : > { %360 = vmatpush.msra.mxu0 %v289_v46  ;;  %401 = vmatmul.f32.vlgmr.msra.gmra.mxu2 %v288_v47 }
  0x2d   : > { %361 = vmatmul.f32.vlgmr.msra.gmra.mxu0 %v288_v47  ;;  %380 = vmatpush.msra.mxu1 %v290_v48 }
  0x2e   : > { %381 = vmatmul.f32.vlgmr.msra.gmra.mxu1 %v288_v47 }
  0xaa   : > { %v362_v52 = vpop.f32.mrf.mxu0 }
  0xab   : > { %v363_v53 = vadd.f32 %v362_v52, %v339_v50  ;;  %v382_v54 = vpop.f32.mrf.mxu1 }
  0xac   : > { %v383_v56 = vadd.f32 %v382_v54, %v340_v51 }
  0xad   : > { %v405_v55 = vmul.f32 0.17677669, %v363_v53 }
  0xae   : > { %407 = vst [vmem:[%s280_s24] sm:$0xff] %v383_v56 }
  0xaf   : > { %406 = vst [vmem:[%s273_s17] sm:$0xff] %v405_v55  ;;  %v402_v58 = vpop.f32.mrf.mxu2 }
  0xb0   : > { %v403_v59 = vadd.f32 %v402_v58, %v341_v57 }
  0xb2   : > { %408 = vst [vmem:[%s287_s26] sm:$0xff] %v403_v59 }
  0xb3 PF: > { %s16_s20 = sadd.s32 1, %s622_s20   ;;  %s856_s18 = smov %s618_s19 }
  0xb4   : > { %p13_p5 = scmp.ge.s32.totalorder %s16_s20, 4   ;;  %s857_s19 = smov %s859_s21 }
  0xb6   :  { %15 = sbr.rel (!%p13_p5) target bundleno = 2 (0x2), region = 86 }

</bundles_post_ra>
